<compile_context>
chip_gen: v7x
topology: tpu7x:2x2x1
jax: 0.10.0
libtpu: 0.0.40
codegen_flags: <defaults>
</compile_context>

<pallas_src>
import jax
import jax.numpy as jnp
from jax import lax
from jax.experimental import pallas as pl
from jax.experimental.pallas import tpu as pltpu

_LANE = 512            # lane-dense block width (multiple of 128)
_MAX_TILE_ROWS = 1024  # 1024*512*4B = 2 MiB/stream/buffer -> 8 MiB double-buffered


def _round_up(x, m):
    return ((x + m - 1) // m) * m


def _row_align(*dtypes):
    """Sublane alignment implied by the narrowest input dtype."""
    itemsize = min(jnp.dtype(d).itemsize for d in dtypes)
    return {4: 8, 2: 16, 1: 32}.get(itemsize, 8)


def _choose_tile_rows(rows, align):
    """Tile row count: multiple of `align`, <= rows, ~2 balanced tiles when possible."""
    if rows <= 2 * _MAX_TILE_ROWS:
        t = _round_up(pl.cdiv(rows, 2), align)   # aim for 2 tiles (v7x megacore)
        return min(t, rows)
    return _round_up(_MAX_TILE_ROWS, align)


def _make_bce_kernel(total_g, tile_rows, strip, binary_gt):
    """Kernel: (strip, LANE) partial sum of BCE terms for one (tile, rep) step."""
    assert tile_rows % strip == 0
    n_strips = tile_rows // strip

    def kernel(p_ref, g_ref, out_ref):
        i = pl.program_id(0)                                  # tile index
        base = i * jnp.int32(tile_rows * _LANE)               # flat offset in rep-slab
        row_iota = lax.broadcasted_iota(jnp.int32, (strip, _LANE), 0)
        lane_iota = lax.broadcasted_iota(jnp.int32, (strip, _LANE), 1)

        def body(s, acc):
            r0 = pl.multiple_of(s * strip, strip)
            p = p_ref[pl.ds(r0, strip), :].astype(jnp.float32)
            g = g_ref[pl.ds(r0, strip), :].astype(jnp.float32)
            if binary_gt:
                # gt is a {0,1} mask: one log per element (halves EUP work).
                p_sel = jnp.where(g > 0.5, p, 1.0 - p)
                term = -jnp.maximum(jnp.log(p_sel), -100.0)
            else:
                # PyTorch BCELoss clamps log at -100 (avoids inf/NaN for p in {0,1}).
                log_p = jnp.maximum(jnp.log(p), -100.0)
                log_1mp = jnp.maximum(jnp.log(1.0 - p), -100.0)
                term = -(g * log_p + (1.0 - g) * log_1mp)
            # Mask AFTER computing term: drops pad / out-of-bounds lanes
            # (including any NaNs from undefined data in the ragged last block).
            idx = base + (r0 + row_iota) * _LANE + lane_iota
            return acc + jnp.where(idx < total_g, term, 0.0)

        acc = lax.fori_loop(0, n_strips, body,
                            jnp.zeros((strip, _LANE), jnp.float32),
                            unroll=min(8, n_strips))
        out_ref[...] = acc

    return kernel


def _bce_mean(pred, gt, rep=1, binary_gt=False):
    """mean(BCE(pred, tile(gt, rep along batch))) without materializing the tile."""
    total_g = int(gt.size)
    total_p = int(pred.size)
    if total_p != rep * total_g:
        raise ValueError(f"pred has {total_p} elements, expected {rep} x {total_g}")

    align = _row_align(pred.dtype, gt.dtype)
    lane_pad = (-total_g) % _LANE
    rows = (total_g + lane_pad) // _LANE
    if rows < align:                      # tiny input: bump to one full sublane tile
        rows = align
    pad_g = rows * _LANE - total_g        # 0 for lane-aligned, non-tiny inputs

    flat_g = gt.reshape(-1)
    flat_p = pred.reshape(rep, total_g)   # free reshape (contiguous)
    if pad_g:
        # Only misaligned / tiny inputs pay this copy; pad values are masked
        # in-kernel so their contents are irrelevant.
        flat_g = jnp.pad(flat_g, (0, pad_g))
        flat_p = jnp.pad(flat_p, ((0, 0), (0, pad_g)))
    g2 = flat_g.reshape(rows, _LANE)
    p3 = flat_p.reshape(rep, rows, _LANE)

    tile_rows = _choose_tile_rows(rows, align)
    n_tiles = pl.cdiv(rows, tile_rows)
    strip = align

    kernel = _make_bce_kernel(total_g, tile_rows, strip, binary_gt)

    partials = pl.pallas_call(
        kernel,
        out_shape=jax.ShapeDtypeStruct((n_tiles * rep * strip, _LANE), jnp.float32),
        grid=(n_tiles, rep),
        in_specs=[
            # pred: one rep-slab tile per step (leading axis squeezed away).
            pl.BlockSpec((None, tile_rows, _LANE), lambda i, r: (r, i, 0)),
            # gt: index_map ignores the rep axis -> block stays resident
            # across consecutive rep steps (no re-DMA, no jnp.tile in HBM).
            pl.BlockSpec((tile_rows, _LANE), lambda i, r: (i, 0)),
        ],
        out_specs=pl.BlockSpec((strip, _LANE), lambda i, r: (i * rep + r, 0)),
        compiler_params=pltpu.CompilerParams(
            dimension_semantics=("parallel", "parallel"),
            vmem_limit_bytes=32 << 20,
        ),
    )(p3, g2)

    return jnp.sum(partials) / jnp.float32(total_p)


def _maxpool_2x2(x):
    # nn.MaxPool2d(2, 2) on NCHW; rare path (only hit when len(preds) > 6),
    # done in plain JAX in the wrapper, not inside the Pallas kernel.
    b, c, h, w = x.shape
    return x.reshape(b, c, h // 2, 2, w // 2, 2).max(axis=(3, 5))


def bce_loss(preds, gt_masks, binary_gt=False):
    """Mirrors BCELoss.forward(preds, gt_masks) from the PyTorch module."""
    if isinstance(preds, (list, tuple)):
        loss_total = jnp.float32(0.0)
        gt = gt_masks
        rep = 1  # logical batch-repeat factor (torch materializes it; we don't)
        for i, pred in enumerate(preds):
            if i > 5:
                gt = _maxpool_2x2(gt)
            logical_shape = (gt.shape[0] * rep,) + tuple(gt.shape[1:])
            if tuple(pred.shape) != logical_shape:
                # mirrors torch: gt_masks = gt_masks.repeat(pred.size(0), 1, 1, 1)
                rep = rep * pred.shape[0]
            loss_total = loss_total + _bce_mean(pred, gt, rep, binary_gt)
        return loss_total / len(preds)
    else:
        pred = preds
        gt = gt_masks
        rep = 1
        if tuple(pred.shape) != tuple(gt.shape):
            rep = pred.shape[0]
        return _bce_mean(pred, gt, rep, binary_gt)


# --------------------------- pure-JAX reference ---------------------------

def _ref_bce_mean(pred, gt):
    p = pred.astype(jnp.float32)
    g = gt.astype(jnp.float32)
    lp = jnp.maximum(jnp.log(p), -100.0)
    l1 = jnp.maximum(jnp.log(1.0 - p), -100.0)
    return -jnp.mean(g * lp + (1.0 - g) * l1)


def _ref_bce_loss(preds, gt_masks):
    if isinstance(preds, (list, tuple)):
        total = jnp.float32(0.0)
        gt = gt_masks
        for i, pred in enumerate(preds):
            if i > 5:
                gt = _maxpool_2x2(gt)
            if tuple(pred.shape) != tuple(gt.shape):
                gt = jnp.tile(gt, (pred.shape[0],) + (1,) * (gt.ndim - 1))
            total = total + _ref_bce_mean(pred, gt)
        return total / len(preds)
    else:
        pred = preds
        gt = gt_masks
        if tuple(pred.shape) != tuple(gt.shape):
            gt = jnp.tile(gt, (pred.shape[0],) + (1,) * (gt.ndim - 1))
        return _ref_bce_mean(pred, gt)


if __name__ == "__main__":
    key = jax.random.PRNGKey(0)
    keys = jax.random.split(key, 9)
    B, C, H, W = 2, 4, 16, 16

    # preds are probability maps (the module feeds them to nn.BCELoss directly).
    preds = tuple(
        jax.nn.sigmoid(jax.random.normal(keys[i], (B, C, H, W), jnp.float32))
        for i in range(6))
    # 7th prediction at half resolution: exercises the i > 5 MaxPool2d(2,2) of gt.
    pred6 = jax.nn.sigmoid(
        jax.random.normal(keys[6], (B, C, H // 2, W // 2), jnp.float32))
    preds = preds + (pred6,)

    gt = (jax.random.uniform(keys[7], (B, C, H, W)) > 0.5).astype(jnp.float32)
    gt_b1 = (jax.random.uniform(keys[8], (1, C, H, W)) > 0.5).astype(jnp.float32)

    # 1) tuple branch (7 preds, includes the maxpooled gt).
    loss_multi = jax.block_until_ready(bce_loss(preds, gt))
    ref_multi = jax.block_until_ready(_ref_bce_loss(preds, gt))
    # 2) single-tensor branch, matching shapes.
    loss_single = jax.block_until_ready(bce_loss(preds[0], gt))
    ref_single = jax.block_until_ready(_ref_bce_loss(preds[0], gt))
    # 3) single-tensor branch with the batch repeat -> index_map broadcast path
    #    (no jnp.tile of gt in HBM).
    loss_rep = jax.block_until_ready(bce_loss(preds[0], gt_b1))
    ref_rep = jax.block_until_ready(_ref_bce_loss(preds[0], gt_b1))
    # 4) binary-mask fast path (single log per element).
    loss_bin = jax.block_until_ready(bce_loss(preds[0], gt, binary_gt=True))

    checks = ((loss_multi, ref_multi), (loss_single, ref_single),
              (loss_rep, ref_rep), (loss_bin, ref_single))
    for got, ref in checks:
        assert jnp.isfinite(got), ("non-finite loss", float(got))
        assert abs(float(got) - float(ref)) < 1e-4, (float(got), float(ref))
    print("KERNEL_OK")
</pallas_src>

<mosaic_0001>
module attributes {stable_mosaic.version = 11 : i64} {
  func.func @kernel(%arg0: i32, %arg1: i32, %arg2: memref<1x8x512xf32, #tpu.memory_space<vmem>>, %arg3: memref<8x512xf32, #tpu.memory_space<vmem>>, %arg4: memref<8x512xf32, #tpu.memory_space<vmem>>) attributes {dimension_semantics = [#tpu.dimension_semantics<parallel>, #tpu.dimension_semantics<parallel>], iteration_bounds = array<i64: 1, 1>, scalar_prefetch = 0 : i64, scratch_operands = 0 : i64, tpu.core_type = #tpu.core_type<tc>, window_params = [{transform_indices = @transform_0, window_bounds = array<i64: 1, 8, 512>}, {transform_indices = @transform_1, window_bounds = array<i64: 8, 512>}, {transform_indices = @transform_2, window_bounds = array<i64: 8, 512>}]} {
    %c4096_i32 = arith.constant 4096 : i32
    %0 = arith.muli %arg0, %c4096_i32 : i32
    %1 = tpu.iota {dimensions = array<i32: 0>} : vector<8x512xi32>
    %2 = tpu.iota {dimensions = array<i32: 1>} : vector<8x512xi32>
    %cst = arith.constant 0.000000e+00 : f32
    %3 = vector.broadcast %cst : f32 to vector<8x512xf32>
    %c0_i32 = arith.constant 0 : i32
    %c8_i32 = arith.constant 8 : i32
    %4 = arith.muli %c0_i32, %c8_i32 : i32
    %5 = tpu.assume_multiple %4, 8 : i32
    %c0 = arith.constant 0 : index
    %6 = arith.index_cast %5 : i32 to index
    %c0_0 = arith.constant 0 : index
    %7 = vector.load %arg2[%c0, %6, %c0_0] : memref<1x8x512xf32, #tpu.memory_space<vmem>>, vector<1x8x512xf32>
    %8 = vector.shape_cast %7 : vector<1x8x512xf32> to vector<8x512xf32>
    %9 = arith.index_cast %5 : i32 to index
    %c0_1 = arith.constant 0 : index
    %10 = vector.load %arg3[%9, %c0_1] : memref<8x512xf32, #tpu.memory_space<vmem>>, vector<8x512xf32>
    %11 = math.log %8 : vector<8x512xf32>
    %cst_2 = arith.constant -1.000000e+02 : f32
    %12 = vector.broadcast %cst_2 : f32 to vector<8x512xf32>
    %13 = arith.maximumf %11, %12 : vector<8x512xf32>
    %cst_3 = arith.constant 1.000000e+00 : f32
    %14 = vector.broadcast %cst_3 : f32 to vector<8x512xf32>
    %15 = arith.subf %14, %8 : vector<8x512xf32>
    %16 = math.log %15 : vector<8x512xf32>
    %cst_4 = arith.constant -1.000000e+02 : f32
    %17 = vector.broadcast %cst_4 : f32 to vector<8x512xf32>
    %18 = arith.maximumf %16, %17 : vector<8x512xf32>
    %19 = arith.mulf %10, %13 : vector<8x512xf32>
    %cst_5 = arith.constant 1.000000e+00 : f32
    %20 = vector.broadcast %cst_5 : f32 to vector<8x512xf32>
    %21 = arith.subf %20, %10 : vector<8x512xf32>
    %22 = arith.mulf %21, %18 : vector<8x512xf32>
    %23 = arith.addf %19, %22 : vector<8x512xf32>
    %cst_6 = arith.constant 0.000000e+00 : f32
    %24 = vector.broadcast %cst_6 : f32 to vector<8x512xf32>
    %25 = arith.subf %24, %23 : vector<8x512xf32>
    %26 = vector.broadcast %5 : i32 to vector<8x512xi32>
    %27 = arith.addi %26, %1 : vector<8x512xi32>
    %c512_i32 = arith.constant 512 : i32
    %28 = vector.broadcast %c512_i32 : i32 to vector<8x512xi32>
    %29 = arith.muli %27, %28 : vector<8x512xi32>
    %30 = vector.broadcast %0 : i32 to vector<8x512xi32>
    %31 = arith.addi %30, %29 : vector<8x512xi32>
    %32 = arith.addi %31, %2 : vector<8x512xi32>
    %c2048_i32 = arith.constant 2048 : i32
    %33 = vector.broadcast %c2048_i32 : i32 to vector<8x512xi32>
    %34 = arith.cmpi slt, %32, %33 : vector<8x512xi32>
    %cst_7 = arith.constant 0.000000e+00 : f32
    %35 = vector.broadcast %cst_7 : f32 to vector<8x512xf32>
    %36 = arith.select %34, %25, %35 : vector<8x512xi1>, vector<8x512xf32>
    %37 = arith.addf %3, %36 : vector<8x512xf32>
    %c1_i32 = arith.constant 1 : i32
    %c0_8 = arith.constant 0 : index
    %c0_9 = arith.constant 0 : index
    %38 = vector.load %arg4[%c0_8, %c0_9] : memref<8x512xf32, #tpu.memory_space<vmem>>, vector<8x512xf32>
    tpu.vector_store %arg4[%c0_8, %c0_9], %37 {strides = array<i32>} : memref<8x512xf32, #tpu.memory_space<vmem>>, vector<8x512xf32>,
    return
  }
  func.func @transform_0(%arg0: i32, %arg1: i32) -> (i32, i32, i32) {
    %c0_i32 = arith.constant 0 : i32
    %c0_i32_0 = arith.constant 0 : i32
    return %arg1, %arg0, %c0_i32 : i32, i32, i32
  }
  func.func @transform_1(%arg0: i32, %arg1: i32) -> (i32, i32) {
    %c0_i32 = arith.constant 0 : i32
    %c0_i32_0 = arith.constant 0 : i32
    return %arg0, %c0_i32 : i32, i32
  }
  func.func @transform_2(%arg0: i32, %arg1: i32) -> (i32, i32) {
    %c1_i32 = arith.constant 1 : i32
    %0 = arith.muli %arg0, %c1_i32 : i32
    %1 = arith.addi %0, %arg1 : i32
    %c0_i32 = arith.constant 0 : i32
    %c0_i32_0 = arith.constant 0 : i32
    return %1, %c0_i32 : i32, i32
  }
}

</mosaic_0001>

<bundles_post_ra>
// kernel: tpu_custom_call.1
= control target key start
LH: loop header
LB: loop body
LE: loop exit
PB: predicated region body
PF: predicated region fallthrough
CT: control target
= control target key end

     0   :  { %7 = vsyncpa [#allocation3], 0  ;;  %s296_s0 = inlined_call_operand.hbm [shape: f32[1,8,512], index: 0, kind: input, shape index: {}]   ;;  %s297_s1 = inlined_call_operand.hbm [shape: f32[8,512], index: 1, kind: input, shape index: {}]   ;;  %s298_s2 = inlined_call_operand.hbm [shape: f32[8,512], index: 2, kind: output, shape index: {}]  }
   0x1   :  { %8 = vsyncpa [#allocation6], 0 }
   0x2   :  { %9 = vsyncpa [#allocation4], 0  ;;  %s242_s9 = smov [#allocation2]   ;;  %s243_s11 = smov [#allocation5]  }
   0x3   :  { %s16_s10 = sshll.u32 %s242_s9, 4  ;;  %s26_s12 = sshll.u32 %s243_s11, 4  ;;  %s17_s10 = int_to_ptr.vmem [resolvable:$true] %s16_s10  ;;  %s27_s12 = int_to_ptr.vmem [resolvable:$true] %s26_s12 }
   0x4   :  { %s170_s15 = scalar_lea.hbm %s296_s0, 512 }
   0x5   :  { %p171_p0 = scmp.ne.s32.totalorder %s296_s0, %s170_s15  ;;  %p174_p1 = scmp.lt.u32.totalorder %s170_s15, %s296_s0 }
   0x7   :  { %p176_p2 = pnand %p174_p1, %p171_p0 }
   0x9   :  { %179 = shalt.err (!%p176_p2)
}
   0xa   :  { %s180_s20 = scalar_lea.vmem %s17_s10, 512  ;;  %p185_p4 = scmp.lt.s32.totalorder %s17_s10, %s17_s10 }
   0xb   :  { %p181_p3 = scmp.ne.s32.totalorder %s17_s10, %s180_s20  ;;  %p186_p5 = scmp.lt.s32.totalorder %s180_s20, %s180_s20 }
   0xd   :  { %p187_p6 = por %p186_p5, %p185_p4 }
   0xf   :  { %p188_p7 = pnand %p187_p6, %p181_p3 }
  0x11   :  { %191 = shalt.err (!%p188_p7)
}
  0x12   :  { %19 = dma.hbm_to_vmem [thread:$0]  %s296_s0, 512, %s17_s10, [#allocation3]  }
  0x13   :  { %s192_s25 = scalar_lea.hbm %s297_s1, 512 }
  0x14   :  { %p193_p8 = scmp.ne.s32.totalorder %s297_s1, %s192_s25  ;;  %p196_p9 = scmp.lt.u32.totalorder %s192_s25, %s297_s1 }
  0x16   :  { %p198_p10 = pnand %p196_p9, %p193_p8 }
  0x18   :  { %201 = shalt.err (!%p198_p10)
}
  0x19   :  { %s202_s30 = scalar_lea.vmem %s27_s12, 512  ;;  %p207_p12 = scmp.lt.s32.totalorder %s27_s12, %s27_s12 }
  0x1a   :  { %p203_p11 = scmp.ne.s32.totalorder %s27_s12, %s202_s30  ;;  %p208_p13 = scmp.lt.s32.totalorder %s202_s30, %s202_s30 }
  0x1c   :  { %p209_p0 = por %p208_p13, %p207_p12 }
  0x1e   :  { %p210_p1 = pnand %p209_p0, %p203_p11 }
  0x20   :  { %213 = shalt.err (!%p210_p1)
}
  0x21   :  { %29 = dma.hbm_to_vmem [thread:$0]  %s297_s1, 512, %s27_s12, [#allocation6]  }
  0x22   :  { %236 = dma.done.wait [#allocation3], 512  }
  0x23   :  { %237 = vsyncadd [#allocation3], 4294966784 }
  0x24   :  { %238 = dma.done.wait [#allocation6], 512  }
  0x25   :  { %239 = vsyncadd [#allocation6], 4294966784  ;;  %v48_v0 = vld [vmem:[#allocation2] sm:$0xff]  ;;  %v49_v1 = vld [vmem:[#allocation2 + $0x8] sm:$0xff]  ;;  %v38_v7 = vlaneseq  ;;  %s244_s1 = smov [#allocation7]  }
  0x26   :  { %154 = vlog2.f32 %v48_v0  ;;  %v70_v2 = vsub.f32 1.0, %v48_v0  ;;  %v50_v3 = vld [vmem:[#allocation2 + $0x10] sm:$0xff]  ;;  %v71_v4 = vsub.f32 1.0, %v49_v1  ;;  %v51_v5 = vld [vmem:[#allocation2 + $0x18] sm:$0xff]  ;;  %v54_v12 = vld [vmem:[#allocation5] sm:$0xff]  ;;  %s141_s4 = sshll.u32 %s244_s1, 4  ;;  %s142_s4 = int_to_ptr.vmem [resolvable:$true] %s141_s4 }
  0x27   :  { %156 = vlog2.f32 %v49_v1  ;;  %v72_v6 = vsub.f32 1.0, %v50_v3  ;;  %v73_v8 = vsub.f32 1.0, %v51_v5  ;;  %v39_v9 = vshrl.u32 %v38_v7, 7  ;;  %v55_v16 = vld [vmem:[#allocation5 + $0x8] sm:$0xff]  ;;  %v56_v25 = vld [vmem:[#allocation5 + $0x10] sm:$0xff]  ;;  %v57_v36 = vld [vmem:[#allocation5 + $0x18] sm:$0xff]  ;;  %p219_p3 = scmp.lt.s32.totalorder %s142_s4, %s142_s4 }
  0x28   :  { %158 = vlog2.f32 %v70_v2  ;;  %v41_v10 = vand.u32 127, %v38_v7  ;;  %v90_v23 = vsub.f32 1.0, %v54_v12  ;;  %v91_v29 = vsub.f32 1.0, %v55_v16  ;;  %s214_s5 = scalar_lea.vmem %s142_s4, 512 }
  0x29   :  { %160 = vlog2.f32 %v71_v4  ;;  %v108_v15 = vmul.u32 512, %v39_v9  ;;  %v92_v41 = vsub.f32 1.0, %v56_v25  ;;  %v93_v50 = vsub.f32 1.0, %v57_v36  ;;  %p215_p2 = scmp.ne.s32.totalorder %s142_s4, %s214_s5  ;;  %p220_p4 = scmp.lt.s32.totalorder %s214_s5, %s214_s5 }
  0x2a   :  { %162 = vlog2.f32 %v50_v3  ;;  %v42_v18 = vadd.s32 128, %v41_v10  ;;  %v43_v24 = vadd.s32 256, %v41_v10  ;;  %v44_v30 = vadd.s32 384, %v41_v10 }
  0x2b   :  { %164 = vlog2.f32 %v72_v6  ;;  %v111_v34 = vadd.s32 %v108_v15, %v41_v10  ;;  %p221_p5 = por %p220_p4, %p219_p3 }
  0x2c   :  { %166 = vlog2.f32 %v51_v5  ;;  %v112_v44 = vadd.s32 %v108_v15, %v42_v18  ;;  %v113_v53 = vadd.s32 %v108_v15, %v43_v24  ;;  %v114_v60 = vadd.s32 %v108_v15, %v44_v30 }
  0x2d   :  { %168 = vlog2.f32 %v73_v8  ;;  %vm115_vm0 = vcmp.lt.s32.totalorder %v111_v34, 2048  ;;  %p222_p6 = pnand %p221_p5, %p215_p2 }
  0x2e   :  { %vm116_vm1 = vcmp.lt.s32.totalorder %v112_v44, 2048  ;;  %vm117_vm2 = vcmp.lt.s32.totalorder %v113_v53, 2048  ;;  %vm118_vm3 = vcmp.lt.s32.totalorder %v114_v60, 2048 }
  0x30   :  { %v155_v11 = vpop.eup %154 }
  0x31   :  { %v157_v13 = vpop.eup %156  ;;  %v59_v14 = vmul.f32 0.6931472, %v155_v11 }
  0x32   :  { %v159_v17 = vpop.eup %158  ;;  %v61_v19 = vmul.f32 0.6931472, %v157_v13 }
  0x33   :  { %v161_v20 = vpop.eup %160  ;;  %v66_v21 = vmax.f32 %v59_v14, -100.0  ;;  %v75_v22 = vmul.f32 0.6931472, %v159_v17 }
  0x34   :  { %v163_v26 = vpop.eup %162  ;;  %v67_v27 = vmax.f32 %v61_v19, -100.0  ;;  %v77_v28 = vmul.f32 0.6931472, %v161_v20 }
  0x35   :  { %v165_v31 = vpop.eup %164  ;;  %v82_v32 = vmax.f32 %v75_v22, -100.0  ;;  %v86_v33 = vmul.f32 %v66_v21, %v54_v12  ;;  %v63_v35 = vmul.f32 0.6931472, %v163_v26 }
  0x36   :  { %v167_v37 = vpop.eup %166  ;;  %v83_v38 = vmax.f32 %v77_v28, -100.0  ;;  %v87_v39 = vmul.f32 %v67_v27, %v55_v16  ;;  %v79_v40 = vmul.f32 0.6931472, %v165_v31 }
  0x37   :  { %v169_v42 = vpop.eup %168  ;;  %v94_v43 = vmul.f32 %v90_v23, %v82_v32  ;;  %v68_v45 = vmax.f32 %v63_v35, -100.0  ;;  %v65_v46 = vmul.f32 0.6931472, %v167_v37 }
  0x38   :  { %v95_v47 = vmul.f32 %v91_v29, %v83_v38  ;;  %v84_v48 = vmax.f32 %v79_v40, -100.0  ;;  %v81_v49 = vmul.f32 0.6931472, %v169_v42 }
  0x39   :  { %v98_v51 = vadd.f32 %v94_v43, %v86_v33  ;;  %v88_v52 = vmul.f32 %v68_v45, %v56_v25  ;;  %v69_v54 = vmax.f32 %v65_v46, -100.0 }
  0x3a   :  { %v99_v55 = vadd.f32 %v95_v47, %v87_v39  ;;  %v96_v56 = vmul.f32 %v92_v41, %v84_v48  ;;  %v85_v57 = vmax.f32 %v81_v49, -100.0 }
  0x3b   :  { %v102_v58 = vsub.f32 0.0, %v98_v51  ;;  %v89_v59 = vmul.f32 %v69_v54, %v57_v36 }
  0x3c   :  { %v103_v61 = vsub.f32 0.0, %v99_v55  ;;  %v100_v62 = vadd.f32 %v96_v56, %v88_v52  ;;  %v97_v63 = vmul.f32 %v93_v50, %v85_v57 }
  0x3d   :  { %v119_v0 = vsel %vm115_vm0, %v102_v58, 0.0 }
  0x3e   :  { %127 = vst [vmem:[#allocation7] sm:$0xff] %v119_v0  ;;  %v120_v1 = vsel %vm116_vm1, %v103_v61, 0.0  ;;  %v104_v2 = vsub.f32 0.0, %v100_v62  ;;  %v101_v3 = vadd.f32 %v97_v63, %v89_v59 }
  0x3f   :  { %128 = vst [vmem:[#allocation7 + $0x8] sm:$0xff] %v120_v1 }
  0x40   :  { %v121_v4 = vsel %vm117_vm2, %v104_v2, 0.0  ;;  %v105_v5 = vsub.f32 0.0, %v101_v3 }
  0x41   :  { %129 = vst [vmem:[#allocation7 + $0x10] sm:$0xff] %v121_v4 }
  0x42   :  { %v122_v6 = vsel %vm118_vm3, %v105_v5, 0.0 }
  0x43   :  { %130 = vst [vmem:[#allocation7 + $0x18] sm:$0xff] %v122_v6 }
  0x44   :  { %225 = shalt.err (!%p222_p6)
}
  0x45   :  { %s226_s8 = scalar_lea.hbm %s298_s2, 512 }
  0x46   :  { %p227_p7 = scmp.ne.s32.totalorder %s298_s2, %s226_s8  ;;  %p230_p8 = scmp.lt.u32.totalorder %s226_s8, %s298_s2 }
  0x48   :  { %p232_p9 = pnand %p230_p8, %p227_p7 }
  0x4a   :  { %235 = shalt.err (!%p232_p9)
}
  0x4b   :  { %144 = dma.vmem_to_hbm [thread:$0]  %s142_s4, 512, %s298_s2, [#allocation4]  }
  0x4c   :  { %240 = dma.done.wait [#allocation4], 512  }
  0x4d   :  { %241 = vsyncadd [#allocation4], 4294966784 }
  0x4e   :  { %148 = vsyncpa [#allocation3], 1 }
  0x4f   :  { %149 = vsyncpa [#allocation6], 1 }
  0x50   :  { %150 = vsyncpa [#allocation4], 1 }

</bundles_post_ra>
